<compile_context>
chip_gen: v7x
topology: tpu7x:2x2x1
jax: 0.10.0
libtpu: 0.0.40
codegen_flags: <defaults>
</compile_context>

<pallas_src>
import functools

import jax
import jax.numpy as jnp
from jax.experimental import pallas as pl
from jax.experimental.pallas import tpu as pltpu

HIDDEN = 256
LANE = 128
SUBLANE = 8


def _round_up(n, m):
    return ((n + m - 1) // m) * m


def dueling_q_kernel(x_ref, w1_ref, w2_ref, b2_ref, wh_ref, bh_ref, q_ref,
                     *, n_actions, n_rows):
    x = x_ref[...]                                                   # [Bp, Kp] bf16

    # fc1 (+ bias folded into w1 via the ones column of x) + relu
    h1 = jnp.dot(x, w1_ref[...], preferred_element_type=jnp.float32)
    h1 = jnp.maximum(h1, 0.0).astype(w2_ref.dtype)                   # bf16 for the MXU

    # fc2 + relu
    h2 = jnp.dot(h1, w2_ref[...], preferred_element_type=jnp.float32) + b2_ref[...]
    h2 = jnp.maximum(h2, 0.0).astype(wh_ref.dtype)                   # bf16 for the MXU

    # Fused head (single lane-dense matmul):
    #   cols [0, n_actions)    -> advantage stream
    #   col  n_actions         -> value stream
    #   cols (n_actions, LANE) -> zero padding
    head = jnp.dot(h2, wh_ref[...], preferred_element_type=jnp.float32) + bh_ref[...]

    col = jax.lax.broadcasted_iota(jnp.int32, head.shape, dimension=1)
    row = jax.lax.broadcasted_iota(jnp.int32, head.shape, dimension=0)
    adv_cols = col < n_actions
    real_row = row < n_rows

    # Value column broadcast to [Bp, 1] via a masked lane-reduction (XLU slot, cheap).
    value = jnp.sum(jnp.where(col == n_actions, head, 0.0), axis=-1, keepdims=True)

    # GLOBAL scalar max over the real batch's advantage entries (matches torch .max()).
    adv_max = jnp.max(jnp.where(adv_cols & real_row, head, -jnp.inf))

    # Lane-dense unmasked store; padding columns/rows hold garbage but are never read.
    q_ref[...] = value + (head - adv_max)


def prepare_params(p, state_dim, n_actions, dtype=jnp.bfloat16):
    """Pack params for the kernel:
       * fold fc1 bias into w1 (extra ones column in x), pad K to a sublane multiple,
       * fuse value/advantage heads into one lane-dense [HIDDEN, 128] weight/bias,
       * cast matmul weights to bf16 (biases added post-dot stay f32)."""
    assert n_actions >= 1 and n_actions + 1 <= LANE, "fused head assumes n_actions+1 <= 128"
    k_pad = _round_up(state_dim + 1, SUBLANE)        # +1 for the bias-fold ones column

    w1 = (jnp.zeros((k_pad, HIDDEN), jnp.float32)
          .at[:state_dim, :].set(p["w1"])
          .at[state_dim, :].set(p["b1"][0]))          # fc1 bias folded in
    wh = (jnp.zeros((HIDDEN, LANE), jnp.float32)
          .at[:, :n_actions].set(p["wa"])
          .at[:, n_actions:n_actions + 1].set(p["wv"]))
    bh = (jnp.zeros((1, LANE), jnp.float32)
          .at[:, :n_actions].set(p["ba"])
          .at[:, n_actions:n_actions + 1].set(p["bv"]))
    return dict(
        w1=w1.astype(dtype),
        w2=p["w2"].astype(dtype),
        b2=p["b2"].astype(jnp.float32),
        wh=wh.astype(dtype),
        bh=bh.astype(jnp.float32),
        state_dim=state_dim,
        k_pad=k_pad,
    )


def dueling_q_forward(x, prep, n_actions):
    """x: [B, state_dim] float32. prep: output of prepare_params."""
    B, state_dim = x.shape
    assert B >= 1 and n_actions >= 1
    assert state_dim == prep["state_dim"]
    k_pad = prep["k_pad"]
    b_pad = _round_up(B, SUBLANE)

    # Pad batch to a sublane multiple, features to K=k_pad, add the bias-fold ones column.
    x_p = (jnp.zeros((b_pad, k_pad), jnp.float32)
           .at[:B, :state_dim].set(x)
           .at[:B, state_dim].set(1.0)).astype(prep["w1"].dtype)

    args = (x_p, prep["w1"], prep["w2"], prep["b2"], prep["wh"], prep["bh"])

    flops = 2 * b_pad * (k_pad * HIDDEN + HIDDEN * HIDDEN + HIDDEN * LANE)
    bytes_accessed = int(sum(a.size * a.dtype.itemsize for a in args)) + b_pad * LANE * 4

    vmem_spec = pl.BlockSpec(memory_space=pltpu.MemorySpace.VMEM)
    kernel = functools.partial(dueling_q_kernel, n_actions=n_actions, n_rows=B)

    q_pad = pl.pallas_call(
        kernel,
        out_shape=jax.ShapeDtypeStruct((b_pad, LANE), jnp.float32),
        in_specs=[vmem_spec] * len(args),
        out_specs=vmem_spec,
        cost_estimate=pl.CostEstimate(flops=flops, transcendentals=0,
                                      bytes_accessed=bytes_accessed),
    )(*args)

    return q_pad[:B, :n_actions]


def init_params(key, state_dim, n_actions, hidden=HIDDEN):
    """Synthetic init mimicking PyTorch nn.Linear default (U[-1/sqrt(fan_in), 1/sqrt(fan_in)]).
    Weights stored as [in_features, out_features]; biases as [1, out_features]."""
    keys = jax.random.split(key, 8)

    def lin(kw, kb, fan_in, fan_out):
        bound = 1.0 / jnp.sqrt(jnp.float32(fan_in))
        w = jax.random.uniform(kw, (fan_in, fan_out), jnp.float32, -bound, bound)
        b = jax.random.uniform(kb, (1, fan_out), jnp.float32, -bound, bound)
        return w, b

    w1, b1 = lin(keys[0], keys[1], state_dim, hidden)
    w2, b2 = lin(keys[2], keys[3], hidden, hidden)
    wv, bv = lin(keys[4], keys[5], hidden, 1)
    wa, ba = lin(keys[6], keys[7], hidden, n_actions)
    return dict(w1=w1, b1=b1, w2=w2, b2=b2, wv=wv, bv=bv, wa=wa, ba=ba)


def reference_forward_f32(x, p):
    """Pure-JAX f32 reference matching the PyTorch forward exactly (unpadded params)."""
    h1 = jnp.maximum(x @ p["w1"] + p["b1"], 0.0)
    h2 = jnp.maximum(h1 @ p["w2"] + p["b2"], 0.0)
    value = h2 @ p["wv"] + p["bv"]
    adv = h2 @ p["wa"] + p["ba"]
    return value + (adv - jnp.max(adv))


def reference_forward_matched(x, prep, n_actions):
    """Pure-JAX reference using the same bf16-rounded weights / cast points as the kernel."""
    B, state_dim = x.shape
    x_p = (jnp.zeros((B, prep["k_pad"]), jnp.float32)
           .at[:, :state_dim].set(x)
           .at[:, state_dim].set(1.0)).astype(prep["w1"].dtype)
    h1 = jnp.maximum(jnp.dot(x_p, prep["w1"], preferred_element_type=jnp.float32), 0.0)
    h1 = h1.astype(prep["w2"].dtype)
    h2 = jnp.maximum(jnp.dot(h1, prep["w2"], preferred_element_type=jnp.float32)
                     + prep["b2"], 0.0)
    h2 = h2.astype(prep["wh"].dtype)
    head = jnp.dot(h2, prep["wh"], preferred_element_type=jnp.float32) + prep["bh"]
    adv = head[:, :n_actions]
    value = head[:, n_actions:n_actions + 1]
    return value + (adv - jnp.max(adv))


if __name__ == "__main__":
    # FlappyBird-v0 (use_lidar=False): 12-dim observation, 2 actions.
    B, STATE_DIM, N_ACTIONS = 8, 12, 2

    key = jax.random.PRNGKey(0)
    k_params, k_x = jax.random.split(key)
    params = init_params(k_params, STATE_DIM, N_ACTIONS)
    prep = prepare_params(params, STATE_DIM, N_ACTIONS)
    x = jax.random.normal(k_x, (B, STATE_DIM), jnp.float32)

    q = dueling_q_forward(x, prep, N_ACTIONS)
    q = jax.block_until_ready(q)
    assert q.shape == (B, N_ACTIONS)

    # Tight check vs a pure-JAX reference that uses the same bf16-rounded weights.
    q_ref_matched = reference_forward_matched(x, prep, N_ACTIONS)
    assert jnp.allclose(q, q_ref_matched, atol=1e-3, rtol=1e-3), "mismatch vs matched reference"

    # Loose check vs the full-f32 PyTorch-equivalent reference (bf16 weights => ~1e-2 error).
    q_ref_f32 = reference_forward_f32(x, params)
    assert jnp.allclose(q, q_ref_f32, atol=5e-2, rtol=5e-2), "mismatch vs f32 reference"

    print("KERNEL_OK")
</pallas_src>

<mosaic_0001>
module attributes {stable_mosaic.version = 11 : i64} {
  func.func @dueling_q_kernel(%arg0: memref<8x16xbf16, #tpu.memory_space<vmem>>, %arg1: memref<16x256xbf16, #tpu.memory_space<vmem>>, %arg2: memref<256x256xbf16, #tpu.memory_space<vmem>>, %arg3: memref<1x256xf32, #tpu.memory_space<vmem>>, %arg4: memref<256x128xbf16, #tpu.memory_space<vmem>>, %arg5: memref<1x128xf32, #tpu.memory_space<vmem>>, %arg6: memref<8x128xf32, #tpu.memory_space<vmem>>) attributes {dimension_semantics = [], scalar_prefetch = 0 : i64, scratch_operands = 0 : i64, tpu.core_type = #tpu.core_type<tc>} {
    %c0 = arith.constant 0 : index
    %c0_0 = arith.constant 0 : index
    %0 = vector.load %arg0[%c0, %c0_0] : memref<8x16xbf16, #tpu.memory_space<vmem>>, vector<8x16xbf16>
    %c0_1 = arith.constant 0 : index
    %c0_2 = arith.constant 0 : index
    %1 = vector.load %arg1[%c0_1, %c0_2] : memref<16x256xbf16, #tpu.memory_space<vmem>>, vector<16x256xbf16>
    %cst = arith.constant dense<0.000000e+00> : vector<8x256xf32>
    %2 = tpu.matmul %0, %1, %cst {dimension_numbers = #tpu.dot_dimension_numbers<[1], [0], [0], [1], [0, 0, 1, 1], [], []>} : vector<8x16xbf16>, vector<16x256xbf16>, vector<8x256xf32> -> vector<8x256xf32>
    %cst_3 = arith.constant 0.000000e+00 : f32
    %3 = vector.broadcast %cst_3 : f32 to vector<8x256xf32>
    %4 = arith.maximumf %2, %3 : vector<8x256xf32>
    %5 = arith.truncf %4 : vector<8x256xf32> to vector<8x256xbf16>
    %c0_4 = arith.constant 0 : index
    %c0_5 = arith.constant 0 : index
    %6 = vector.load %arg2[%c0_4, %c0_5] : memref<256x256xbf16, #tpu.memory_space<vmem>>, vector<256x256xbf16>
    %cst_6 = arith.constant dense<0.000000e+00> : vector<8x256xf32>
    %7 = tpu.matmul %5, %6, %cst_6 {dimension_numbers = #tpu.dot_dimension_numbers<[1], [0], [0], [1], [0, 0, 1, 1], [], []>} : vector<8x256xbf16>, vector<256x256xbf16>, vector<8x256xf32> -> vector<8x256xf32>
    %c0_7 = arith.constant 0 : index
    %c0_8 = arith.constant 0 : index
    %8 = vector.load %arg3[%c0_7, %c0_8] : memref<1x256xf32, #tpu.memory_space<vmem>>, vector<1x256xf32>
    %9 = vector.broadcast %8 : vector<1x256xf32> to vector<8x256xf32>
    %10 = arith.addf %7, %9 : vector<8x256xf32>
    %cst_9 = arith.constant 0.000000e+00 : f32
    %11 = vector.broadcast %cst_9 : f32 to vector<8x256xf32>
    %12 = arith.maximumf %10, %11 : vector<8x256xf32>
    %13 = arith.truncf %12 : vector<8x256xf32> to vector<8x256xbf16>
    %c0_10 = arith.constant 0 : index
    %c0_11 = arith.constant 0 : index
    %14 = vector.load %arg4[%c0_10, %c0_11] : memref<256x128xbf16, #tpu.memory_space<vmem>>, vector<256x128xbf16>
    %cst_12 = arith.constant dense<0.000000e+00> : vector<8x128xf32>
    %15 = tpu.matmul %13, %14, %cst_12 {dimension_numbers = #tpu.dot_dimension_numbers<[1], [0], [0], [1], [0, 0, 1, 1], [], []>} : vector<8x256xbf16>, vector<256x128xbf16>, vector<8x128xf32> -> vector<8x128xf32>
    %c0_13 = arith.constant 0 : index
    %c0_14 = arith.constant 0 : index
    %16 = vector.load %arg5[%c0_13, %c0_14] : memref<1x128xf32, #tpu.memory_space<vmem>>, vector<1x128xf32>
    %17 = vector.broadcast %16 : vector<1x128xf32> to vector<8x128xf32>
    %18 = arith.addf %15, %17 : vector<8x128xf32>
    %19 = tpu.iota {dimensions = array<i32: 1>} : vector<8x128xi32>
    %20 = tpu.iota {dimensions = array<i32: 0>} : vector<8x128xi32>
    %c2_i32 = arith.constant 2 : i32
    %21 = vector.broadcast %c2_i32 : i32 to vector<8x128xi32>
    %22 = arith.cmpi slt, %19, %21 : vector<8x128xi32>
    %c8_i32 = arith.constant 8 : i32
    %23 = vector.broadcast %c8_i32 : i32 to vector<8x128xi32>
    %24 = arith.cmpi slt, %20, %23 : vector<8x128xi32>
    %c2_i32_15 = arith.constant 2 : i32
    %25 = vector.broadcast %c2_i32_15 : i32 to vector<8x128xi32>
    %26 = arith.cmpi eq, %19, %25 : vector<8x128xi32>
    %cst_16 = arith.constant 0.000000e+00 : f32
    %27 = vector.broadcast %cst_16 : f32 to vector<8x128xf32>
    %28 = arith.select %26, %18, %27 : vector<8x128xi1>, vector<8x128xf32>
    %cst_17 = arith.constant dense<0.000000e+00> : vector<8xf32>
    %29 = vector.multi_reduction <add>, %28, %cst_17 [1] : vector<8x128xf32> to vector<8xf32>
    %30 = vector.shape_cast %29 : vector<8xf32> to vector<8x1xf32>
    %31 = arith.andi %22, %24 : vector<8x128xi1>
    %cst_18 = arith.constant 0xFF800000 : f32
    %32 = vector.broadcast %cst_18 : f32 to vector<8x128xf32>
    %33 = arith.select %31, %18, %32 : vector<8x128xi1>, vector<8x128xf32>
    %34 = vector.shape_cast %33 : vector<8x128xf32> to vector<1x8x128xf32>
    %cst_19 = arith.constant dense<0xFF800000> : vector<1xf32>
    %35 = vector.multi_reduction <maximumf>, %34, %cst_19 [1, 2] : vector<1x8x128xf32> to vector<1xf32>
    %36 = vector.shape_cast %35 : vector<1xf32> to vector<1x1x1xf32>
    %37 = vector.extract %36[0, 0, 0] : f32 from vector<1x1x1xf32>
    %38 = vector.broadcast %37 : f32 to vector<8x128xf32>
    %39 = arith.subf %18, %38 : vector<8x128xf32>
    %40 = vector.broadcast %30 : vector<8x1xf32> to vector<8x128xf32>
    %41 = arith.addf %40, %39 : vector<8x128xf32>
    %c0_20 = arith.constant 0 : index
    %c0_21 = arith.constant 0 : index
    %42 = vector.load %arg6[%c0_20, %c0_21] : memref<8x128xf32, #tpu.memory_space<vmem>>, vector<8x128xf32>
    tpu.vector_store %arg6[%c0_20, %c0_21], %41 {strides = array<i32>} : memref<8x128xf32, #tpu.memory_space<vmem>>, vector<8x128xf32>,
    return
  }
}

</mosaic_0001>

<bundles_post_ra>
// kernel: tpu_custom_call.1
= control target key start
LH: loop header
LB: loop body
LE: loop exit
PB: predicated region body
PF: predicated region fallthrough
CT: control target
= control target key end

     0   :  { %11 = vsyncpa [#allocation3], 0  ;;  %s994_s0 = inlined_call_operand.hbm [shape: bf16[8,16], index: 0, kind: input, shape index: {}]   ;;  %s995_s1 = inlined_call_operand.hbm [shape: bf16[16,256], index: 1, kind: input, shape index: {}]   ;;  %s996_s2 = inlined_call_operand.hbm [shape: bf16[256,256], index: 2, kind: input, shape index: {}]   ;;  %s997_s3 = inlined_call_operand.vmem [shape: f32[1,256], index: 3, kind: input, shape index: {}]   ;;  %s998_s4 = inlined_call_operand.hbm [shape: bf16[256,128], index: 4, kind: input, shape index: {}]   ;;  %s999_s5 = inlined_call_operand.vmem [shape: f32[1,128], index: 5, kind: input, shape index: {}]   ;;  %s1000_s6 = inlined_call_operand.hbm [shape: f32[8,128], index: 6, kind: output, shape index: {}]  }
   0x1   :  { %12 = vsyncpa [#allocation6], 0 }
   0x2   :  { %13 = vsyncpa [#allocation9], 0 }
   0x3   :  { %14 = vsyncpa [#allocation4], 0  ;;  %s877_s21 = smov [#allocation5]   ;;  %s759_s25 = scalar_lea.hbm %s995_s1, 256 }
   0x4   :  { %s30_s22 = sshll.u32 %s877_s21, 4  ;;  %p760_p0 = scmp.ne.s32.totalorder %s995_s1, %s759_s25  ;;  %s31_s22 = int_to_ptr.vmem [resolvable:$true] %s30_s22 }
   0x5   :  { %p763_p1 = scmp.lt.u32.totalorder %s759_s25, %s995_s1 }
   0x7   :  { %p765_p2 = pnand %p763_p1, %p760_p0 }
   0x9   :  { %768 = shalt.err (!%p765_p2)
}
   0xa   :  { %s769_s30 = scalar_lea.vmem %s31_s22, 256  ;;  %p774_p4 = scmp.lt.s32.totalorder %s31_s22, %s31_s22 }
   0xb   :  { %p770_p3 = scmp.ne.s32.totalorder %s31_s22, %s769_s30  ;;  %p775_p5 = scmp.lt.s32.totalorder %s769_s30, %s769_s30 }
   0xd   :  { %p776_p6 = por %p775_p5, %p774_p4 }
   0xf   :  { %p777_p7 = pnand %p776_p6, %p770_p3 }
  0x11   :  { %780 = shalt.err (!%p777_p7)
}
  0x12   :  { %s878_s7 = smov 128   ;;  %s879_s8 = smov 8  }
  0x13   :  { %36 = dma.hbm_to_vmem [thread:$0]  %s995_s1, 256, %s31_s22, [#allocation6], %s878_s7, %s878_s7, %s879_s8  }
  0x14   :  { %s880_s11 = smov [#allocation2]   ;;  %s881_s13 = smov [#allocation7]  }
  0x15   :  { %s21_s12 = sshll.u32 %s880_s11, 4  ;;  %s42_s14 = sshll.u32 %s881_s13, 4  ;;  %s22_s12 = int_to_ptr.vmem [resolvable:$true] %s21_s12  ;;  %s43_s14 = int_to_ptr.vmem [resolvable:$true] %s42_s14 }
  0x16   :  { %s781_s17 = scalar_lea.hbm %s994_s0, 64 }
  0x17   :  { %p782_p8 = scmp.ne.s32.totalorder %s994_s0, %s781_s17  ;;  %p785_p9 = scmp.lt.u32.totalorder %s781_s17, %s994_s0 }
  0x19   :  { %p787_p10 = pnand %p785_p9, %p782_p8 }
  0x1b   :  { %790 = shalt.err (!%p787_p10)
}
  0x1c   :  { %s791_s1 = scalar_lea.vmem %s22_s12, 64  ;;  %p796_p12 = scmp.lt.s32.totalorder %s22_s12, %s22_s12 }
  0x1d   :  { %p792_p11 = scmp.ne.s32.totalorder %s22_s12, %s791_s1  ;;  %p797_p13 = scmp.lt.s32.totalorder %s791_s1, %s791_s1 }
  0x1f   :  { %p798_p0 = por %p797_p13, %p796_p12 }
  0x21   :  { %p799_p1 = pnand %p798_p0, %p792_p11 }
  0x23   :  { %802 = shalt.err (!%p799_p1)
}
  0x24   :  { %24 = dma.hbm_to_vmem [thread:$0]  %s994_s0, 64, %s22_s12, [#allocation3]  }
  0x25   :  { %s803_s26 = scalar_lea.hbm %s996_s2, 4096 }
  0x26   :  { %p804_p2 = scmp.ne.s32.totalorder %s996_s2, %s803_s26  ;;  %p807_p3 = scmp.lt.u32.totalorder %s803_s26, %s996_s2 }
  0x28   :  { %p809_p4 = pnand %p807_p3, %p804_p2 }
  0x2a   :  { %812 = shalt.err (!%p809_p4)
}
  0x2b   :  { %s813_s9 = scalar_lea.vmem %s43_s14, 4096  ;;  %p818_p6 = scmp.lt.s32.totalorder %s43_s14, %s43_s14 }
  0x2c   :  { %p814_p5 = scmp.ne.s32.totalorder %s43_s14, %s813_s9  ;;  %p819_p7 = scmp.lt.s32.totalorder %s813_s9, %s813_s9 }
  0x2e   :  { %p820_p8 = por %p819_p7, %p818_p6 }
  0x30   :  { %p821_p9 = pnand %p820_p8, %p814_p5 }
  0x32   :  { %824 = shalt.err (!%p821_p9)
}
  0x33   :  { %48 = dma.hbm_to_vmem [thread:$0]  %s996_s2, 4096, %s43_s14, [#allocation6], %s878_s7, %s878_s7, %s879_s8  }
  0x34   :  { %s882_s11 = smov [#allocation8]   ;;  %s825_s16 = scalar_lea.hbm %s998_s4, 2048 }
  0x35   :  { %s56_s12 = sshll.u32 %s882_s11, 4  ;;  %p826_p10 = scmp.ne.s32.totalorder %s998_s4, %s825_s16  ;;  %s57_s12 = int_to_ptr.vmem [resolvable:$true] %s56_s12 }
  0x36   :  { %p829_p11 = scmp.lt.u32.totalorder %s825_s16, %s998_s4 }
  0x38   :  { %p831_p12 = pnand %p829_p11, %p826_p10 }
  0x3a   :  { %834 = shalt.err (!%p831_p12)
}
  0x3b   :  { %s835_s21 = scalar_lea.vmem %s57_s12, 2048  ;;  %p840_p0 = scmp.lt.s32.totalorder %s57_s12, %s57_s12 }
  0x3c   :  { %p836_p13 = scmp.ne.s32.totalorder %s57_s12, %s835_s21  ;;  %p841_p1 = scmp.lt.s32.totalorder %s835_s21, %s835_s21 }
  0x3e   :  { %p842_p2 = por %p841_p1, %p840_p0 }
  0x40   :  { %p843_p3 = pnand %p842_p2, %p836_p13 }
  0x42   :  { %846 = shalt.err (!%p843_p3)
}
  0x43   :  { %s883_s2 = smov 64   ;;  %s884_s7 = smov 4  }
  0x44   :  { %62 = dma.hbm_to_vmem [thread:$0]  %s998_s4, 2048, %s57_s12, [#allocation9], %s883_s2, %s883_s2, %s884_s7  }
  0x45   :  { %869 = dma.done.wait [#allocation3], 64  }
  0x46   :  { %870 = vsyncadd [#allocation3], 4294967232 }
  0x47   :  { %871 = dma.done.wait [#allocation6], 4352  }
  0x48   :  { %872 = vsyncadd [#allocation6], 4294962944 }
  0x49   :  { %873 = dma.done.wait [#allocation9], 2048  }
  0x4a   :  { %874 = vsyncadd [#allocation9], 4294965248  ;;  %v885_v0 = vmov 0   ;;  %v692_v1 = vld [vmem:[#allocation5 + $0x4] ss:$8 sps:$4 sm:$0xff]   ;;  %vm91_vm0 = vcmask 130048   ;;  %v174_v60 = vlaneseq }
  0x4b   :  { %127 = vmatprep.mubr.bf16.mxu0 %v885_v0  ;;  %v694_v2 = vld [vmem:[#allocation5] ss:$8 sps:$4 sm:$0xff]   ;;  %v78_v3 = vld [vmem:[#allocation2] sm:$0xf]  ;;  %95 = vmatprep.subr.bf16.mxu0 %v692_v1  ;;  %v697_v5 = vld [vmem:[#allocation7] ss:$8 sps:$4 sm:$0xff]  }
  0x4c   :  { %v695_v4 = vld [vmem:[#allocation7 + $0x4] ss:$8 sps:$4 sm:$0xff]   ;;  %96 = vmatpush1.bf16.msra.mxu0 %v694_v2  ;;  %v698_v6 = vld [vmem:[#allocation7 + $0x14] ss:$8 sps:$4 sm:$0xff]   ;;  %v700_v7 = vld [vmem:[#allocation7 + $0x10] ss:$8 sps:$4 sm:$0xff]  }
  0x4d   :  { %344 = vmatprep.subr.bf16.mxu1 %v695_v4  ;;  %v701_v8 = vld [vmem:[#allocation7 + $0x24] ss:$8 sps:$4 sm:$0xff]   ;;  %v703_v9 = vld [vmem:[#allocation7 + $0x20] ss:$8 sps:$4 sm:$0xff]   ;;  %v704_v10 = vld [vmem:[#allocation7 + $0x34] ss:$8 sps:$4 sm:$0xff]  }
  0x4e   :  { %345 = vmatpush1.bf16.msra.mxu1 %v697_v5  ;;  %v706_v11 = vld [vmem:[#allocation7 + $0x30] ss:$8 sps:$4 sm:$0xff]   ;;  %v707_v12 = vld [vmem:[#allocation7 + $0x44] ss:$8 sps:$4 sm:$0xff]   ;;  %v709_v13 = vld [vmem:[#allocation7 + $0x40] ss:$8 sps:$4 sm:$0xff]  }
  0x4f   :  { %608 = vmatmul.mubr.msk.bf16.vlgmr.msra.gmra.mrb[0].mxu0 %vm91_vm0, %v78_v3  ;;  %346 = vmatprep.subr.bf16.mxu1 %v698_v6  ;;  %v710_v14 = vld [vmem:[#allocation7 + $0x54] ss:$8 sps:$4 sm:$0xff]   ;;  %v712_v15 = vld [vmem:[#allocation7 + $0x50] ss:$8 sps:$4 sm:$0xff]   ;;  %v713_v16 = vld [vmem:[#allocation7 + $0x64] ss:$8 sps:$4 sm:$0xff]  }
  0x50   :  { %v715_v17 = vld [vmem:[#allocation7 + $0x60] ss:$8 sps:$4 sm:$0xff]   ;;  %v716_v18 = vld [vmem:[#allocation7 + $0x74] ss:$8 sps:$4 sm:$0xff]   ;;  %v718_v19 = vld [vmem:[#allocation7 + $0x70] ss:$8 sps:$4 sm:$0xff]  }
  0x51   :  { %v719_v20 = vld [vmem:[#allocation7 + $0x84] ss:$8 sps:$4 sm:$0xff]   ;;  %v721_v21 = vld [vmem:[#allocation7 + $0x80] ss:$8 sps:$4 sm:$0xff]   ;;  %v722_v22 = vld [vmem:[#allocation7 + $0x94] ss:$8 sps:$4 sm:$0xff]  }
  0x52   :  { %347 = vmatpush1.bf16.msra.mxu1 %v700_v7  ;;  %v724_v23 = vld [vmem:[#allocation7 + $0x90] ss:$8 sps:$4 sm:$0xff]   ;;  %v725_v24 = vld [vmem:[#allocation7 + $0xa4] ss:$8 sps:$4 sm:$0xff]   ;;  %v727_v25 = vld [vmem:[#allocation7 + $0xa0] ss:$8 sps:$4 sm:$0xff]  }
  0x53   :  { %348 = vmatprep.subr.bf16.mxu1 %v701_v8  ;;  %v728_v26 = vld [vmem:[#allocation7 + $0xb4] ss:$8 sps:$4 sm:$0xff]   ;;  %v730_v27 = vld [vmem:[#allocation7 + $0xb0] ss:$8 sps:$4 sm:$0xff]   ;;  %v731_v28 = vld [vmem:[#allocation7 + $0xc4] ss:$8 sps:$4 sm:$0xff]  }
  0x54   :  { %v733_v29 = vld [vmem:[#allocation7 + $0xc0] ss:$8 sps:$4 sm:$0xff]   ;;  %v734_v30 = vld [vmem:[#allocation7 + $0xd4] ss:$8 sps:$4 sm:$0xff]   ;;  %v736_v31 = vld [vmem:[#allocation7 + $0xd0] ss:$8 sps:$4 sm:$0xff]  }
  0x55   :  { %v737_v32 = vld [vmem:[#allocation7 + $0xe4] ss:$8 sps:$4 sm:$0xff]   ;;  %v739_v33 = vld [vmem:[#allocation7 + $0xe0] ss:$8 sps:$4 sm:$0xff]   ;;  %v740_v34 = vld [vmem:[#allocation7 + $0xf4] ss:$8 sps:$4 sm:$0xff]  }
  0x56   :  { %349 = vmatpush1.bf16.msra.mxu1 %v703_v9  ;;  %v742_v35 = vld [vmem:[#allocation7 + $0xf0] ss:$8 sps:$4 sm:$0xff]   ;;  %v743_v36 = vld [vmem:[#allocation8 + $0x40] sm:$0xff]   ;;  %v745_v38 = vld [vmem:[#allocation8 + $0x48] sm:$0xff]   ;;  %v175_v61 = vshrl.u32 %v174_v60, 7 }
  0x57   :  { %350 = vmatprep.subr.bf16.mxu1 %v704_v10  ;;  %v744_v37 = vld [vmem:[#allocation8] sm:$0xff]   ;;  %658 = vmatprep.subr.bf16.mxu0 %v743_v36  ;;  %v746_v39 = vld [vmem:[#allocation8 + $0x8] sm:$0xff]   ;;  %v747_v40 = vld [vmem:[#allocation8 + $0x50] sm:$0xff]  }
  0x58   :  { %659 = vmatpush3.bf16.msra.mxu0 %v744_v37  ;;  %v748_v41 = vld [vmem:[#allocation8 + $0x10] sm:$0xff]   ;;  %v749_v42 = vld [vmem:[#allocation8 + $0x58] sm:$0xff]   ;;  %v751_v44 = vld [vmem:[#allocation8 + $0x60] sm:$0xff]   ;;  %v176_v62 = vsub.s32 0, %v175_v61  ;;  %v180_v0 = vsub.s32 1, %v175_v61 }
  0x59   :  { %660 = vmatprep.subr.bf16.mxu0 %v745_v38  ;;  %v750_v43 = vld [vmem:[#allocation8 + $0x18] sm:$0xff]   ;;  %v752_v45 = vld [vmem:[#allocation8 + $0x20] sm:$0xff]   ;;  %v753_v46 = vld [vmem:[#allocation8 + $0x68] sm:$0xff]  }
  0x5a   :  { %351 = vmatpush1.bf16.msra.mxu1 %v706_v11  ;;  %v754_v47 = vld [vmem:[#allocation8 + $0x28] sm:$0xff]   ;;  %v755_v56 = vld [vmem:[#allocation8 + $0x70] sm:$0xff]   ;;  %v757_v58 = vld [vmem:[#allocation8 + $0x78] sm:$0xff]  }
  0x5b   :  { %352 = vmatprep.subr.bf16.mxu1 %v707_v12  ;;  %v756_v57 = vld [vmem:[#allocation8 + $0x30] sm:$0xff]   ;;  %v758_v59 = vld [vmem:[#allocation8 + $0x38] sm:$0xff]   ;;  %v172_v63 = vld [vmem:[%s997_s3] sm:$0x3] }
  0x5c   :  { %661 = vmatpush3.bf16.msra.mxu0 %v746_v39  ;;  %v177_v1 = vrot.slane %v172_v63, %v176_v62  ;;  %v181_v2 = vrot.slane %v172_v63, %v180_v0 }
  0x5d   :  { %662 = vmatprep.subr.bf16.mxu0 %v747_v40 }
  0x5e   :  { %353 = vmatpush1.bf16.msra.mxu1 %v709_v13  ;;  %v565_v13 = vand.u32 127, %v174_v60 }
  0x5f   :  { %354 = vmatprep.subr.bf16.mxu1 %v710_v14 }
  0x60   :  { %663 = vmatpush3.bf16.msra.mxu0 %v748_v41  ;;  %vm568_vm1 = vcmp.lt.s32.totalorder %v565_v13, 2  ;;  %vm570_vm2 = vcmp.eq.s32.totalorder %v565_v13, 2 }
  0x61   :  { %664 = vmatprep.subr.bf16.mxu0 %v749_v42 }
  0x62   :  { %355 = vmatpush1.bf16.msra.mxu1 %v712_v15  ;;  %v641_v15 = vld [vmem:[%s999_s5] ss:$0 sm:$0xff]  ;;  %s886_s5 = smov [#allocation10]  }
  0x63   :  { %356 = vmatprep.subr.bf16.mxu1 %v713_v16  ;;  %s595_s24 = sshll.u32 %s886_s5, 4  ;;  %s596_s24 = int_to_ptr.vmem [resolvable:$true] %s595_s24 }
  0x64   :  { %665 = vmatpush3.bf16.msra.mxu0 %v750_v43  ;;  %s847_s25 = scalar_lea.vmem %s596_s24, 128  ;;  %p852_p5 = scmp.lt.s32.totalorder %s596_s24, %s596_s24 }
  0x65   :  { %666 = vmatprep.subr.bf16.mxu0 %v751_v44  ;;  %p848_p4 = scmp.ne.s32.totalorder %s596_s24, %s847_s25  ;;  %p853_p6 = scmp.lt.s32.totalorder %s847_s25, %s847_s25 }
  0x66   :  { %357 = vmatpush1.bf16.msra.mxu1 %v715_v17 }
  0x67   :  { %358 = vmatprep.subr.bf16.mxu1 %v716_v18  ;;  %p854_p7 = por %p853_p6, %p852_p5 }
  0x68   :  { %667 = vmatpush3.bf16.msra.mxu0 %v752_v45 }
  0x69   :  { %668 = vmatprep.subr.bf16.mxu0 %v753_v46  ;;  %p855_p8 = pnand %p854_p7, %p848_p4 }
  0x6a   :  { %359 = vmatpush1.bf16.msra.mxu1 %v718_v19 }
  0x6b   :  { %360 = vmatprep.subr.bf16.mxu1 %v719_v20 }
  0x6c   :  { %669 = vmatpush3.bf16.msra.mxu0 %v754_v47 }
  0x6d   :  { %670 = vmatprep.subr.bf16.mxu0 %v755_v56 }
  0x6e   :  { %361 = vmatpush1.bf16.msra.mxu1 %v721_v21 }
  0x6f   :  { %362 = vmatprep.subr.bf16.mxu1 %v722_v22 }
  0x70   :  { %671 = vmatpush3.bf16.msra.mxu0 %v756_v57 }
  0x71   :  { %672 = vmatprep.subr.bf16.mxu0 %v757_v58 }
  0x72   :  { %363 = vmatpush1.bf16.msra.mxu1 %v724_v23 }
  0x73   :  { %364 = vmatprep.subr.bf16.mxu1 %v725_v24 }
  0x74   :  { %673 = vmatpush3.bf16.msra.mxu0 %v758_v59 }
  0x76   :  { %365 = vmatpush1.bf16.msra.mxu1 %v727_v25 }
  0x77   :  { %366 = vmatprep.subr.bf16.mxu1 %v728_v26 }
  0x7a   :  { %367 = vmatpush1.bf16.msra.mxu1 %v730_v27 }
  0x7b   :  { %368 = vmatprep.subr.bf16.mxu1 %v731_v28 }
  0x7e   :  { %369 = vmatpush1.bf16.msra.mxu1 %v733_v29 }
  0x7f   :  { %370 = vmatprep.subr.bf16.mxu1 %v734_v30 }
  0x82   :  { %371 = vmatpush1.bf16.msra.mxu1 %v736_v31 }
  0x83   :  { %372 = vmatprep.subr.bf16.mxu1 %v737_v32 }
  0x86   :  { %373 = vmatpush1.bf16.msra.mxu1 %v739_v33 }
  0x87   :  { %374 = vmatprep.subr.bf16.mxu1 %v740_v34 }
  0x8a   :  { %375 = vmatpush1.bf16.msra.mxu1 %v742_v35 }
 0x122   :  { %v129_v48 = vpop.f32.mrb[0].mxu0 }
 0x123   :  { %v136_v49 = vmax.f32 %v129_v48, 0.0  ;;  %v131_v50 = vpop.f32.mrb[1].mxu0 }
 0x124   :  { %v133_v51 = vpop.f32.mrb[2].mxu0  ;;  %v137_v52 = vmax.f32 %v131_v50, 0.0 }
 0x125   :  { %v134_v53 = vpop.f32.mrb[3].mxu0  ;;  %v138_v55 = vpack.c.bf16 %v136_v49, %v136_v49 }
 0x126   :  { %v139_v54 = vpack.c.bf16 %v137_v52, %v137_v52 }
 0x128   :  { %376 = vmatprep.mubr.bf16.mxu1 %v139_v54 }
 0x129   :  { %377 = vmatmul.mubr.bf16.vlgmr.msra.gmra.mrb[0].mxu1 %v138_v55 }
 0x1fc   :  { %v378_v3 = vpop.f32.mrb[0].mxu1 }
 0x1fd   :  { %v379_v4 = vadd.f32 %v378_v3, %v177_v1  ;;  %v380_v5 = vpop.f32.mrb[1].mxu1 }
 0x1fe   :  { %v381_v6 = vadd.f32 %v380_v5, %v181_v2  ;;  %v382_v7 = vpop.f32.mrb[2].mxu1 }
 0x1ff   :  { %v385_v8 = vmax.f32 %v379_v4, 0.0  ;;  %v383_v9 = vpop.f32.mrb[3].mxu1 }
 0x200   :  { %v386_v10 = vmax.f32 %v381_v6, 0.0 }
 0x201   :  { %v387_v12 = vpack.c.bf16 %v385_v8, %v385_v8 }
 0x202   :  { %v388_v11 = vpack.c.bf16 %v386_v10, %v386_v10 }
 0x204   :  { %556 = vmatprep.mubr.bf16.mxu0 %v388_v11 }
 0x205   :  { %557 = vmatmul.mubr.bf16.vlgmr.msra.gmra.mrb[4].mxu0 %v387_v12 }
 0x2d8   :  { %v674_v14 = vpop.f32.mrb[4].mxu0 }
 0x2d9   :  { %v675_v16 = vpop.f32.mrb[5].mxu0 }
 0x2da   :  { %v676_v17 = vadd.f32 %v675_v16, %v674_v14  ;;  %v677_v18 = vpop.f32.mrb[6].mxu0 }
 0x2db   :  { %v678_v19 = vpop.f32.mrb[7].mxu0 }
 0x2dc   :  { %v559_v20 = vadd.f32 %v676_v17, %v641_v15 }
 0x2de   :  { %v575_v21 = vsel %vm568_vm1, %v559_v20, -inf  ;;  %v571_v22 = vsel %vm570_vm2, %v559_v20, 0.0 }
 0x2df   :  { %576 = vmax.xlane.f32.xlu0 %v575_v21 }
 0x2e3   :  { %572 = vadd.xlane.f32.xlu0 %v571_v22 }
 0x36c   :  { %v577_v23 = vpop.xlane.xlu0 %576 }
 0x36d   :  { %v578_v24 = vrot.slane %v577_v23, 4 }
 0x36f   :  { %v579_v25 = vmax.f32 %v577_v23, %v578_v24 }
 0x370   :  { %v573_v32 = vpop.xlane.xlu0 %572 }
 0x371   :  { %v580_v26 = vrot.slane %v579_v25, 2 }
 0x373   :  { %v581_v27 = vmax.f32 %v579_v25, %v580_v26 }
 0x375   :  { %v582_v28 = vrot.slane %v581_v27, 1 }
 0x377   :  { %v583_v29 = vmax.f32 %v581_v27, %v582_v28 }
 0x379   :  { %680 = vpush %v583_v29 }
 0x3aa   :  { %s681_s3 = spop %680 }
 0x3ab   :  { %v585_v30 = vstv %s681_s3 }
 0x3ac   :  { %v586_v31 = vsub.f32 %v559_v20, %v585_v30 }
 0x3ae   :  { %v587_v33 = vadd.f32 %v586_v31, %v573_v32 }
 0x3b0   :  { %588 = vst [vmem:[#allocation10] sm:$0xff] %v587_v33 }
 0x3b1   :  { %858 = shalt.err (!%p855_p8)
}
 0x3b2   :  { %s859_s28 = scalar_lea.hbm %s1000_s6, 128 }
 0x3b3   :  { %p860_p9 = scmp.ne.s32.totalorder %s1000_s6, %s859_s28  ;;  %p863_p10 = scmp.lt.u32.totalorder %s859_s28, %s1000_s6 }
 0x3b5   :  { %p865_p11 = pnand %p863_p10, %p860_p9 }
 0x3b7   :  { %868 = shalt.err (!%p865_p11)
}
 0x3b8   :  { %598 = dma.vmem_to_hbm [thread:$0]  %s596_s24, 128, %s1000_s6, [#allocation4]  }
 0x3b9   :  { %875 = dma.done.wait [#allocation4], 128  }
 0x3ba   :  { %876 = vsyncadd [#allocation4], 4294967168 }
 0x3bb   :  { %602 = vsyncpa [#allocation3], 1 }
 0x3bc   :  { %603 = vsyncpa [#allocation6], 1 }
 0x3bd   :  { %604 = vsyncpa [#allocation9], 1 }
 0x3be   :  { %605 = vsyncpa [#allocation4], 1 }

</bundles_post_ra>
